<compile_context>
chip_gen: v6e
topology: v6e:2x2x1
jax: 0.10.0
libtpu: 0.0.40
codegen_flags: <defaults>
</compile_context>

<pallas_src>
import jax
import jax.numpy as jnp
from jax.experimental import pallas as pl
from jax.experimental.pallas import tpu as pltpu


def _query_kernel(q_ref, emb_ref, o_ref, counts_ref):
    # q_ref:      (TB, S)  int32   -- query token ids for this batch tile
    # emb_ref:    (V, TD)  float32 -- embedding-table slice for this D tile
    # o_ref:      (TB, TD) float32 -- summed embeddings for this tile
    # counts_ref: (TB, V)  float32 -- VMEM scratch, per-batch-tile token counts
    j = pl.program_id(1)

    # counts depend only on the batch tile -> compute once per batch tile
    # (d-tile axis is "arbitrary"/sequential, so j == 0 runs first).
    @pl.when(j == 0)
    def _():
        ids = q_ref[...]                                         # (TB, S)
        TB, S = ids.shape
        V = counts_ref.shape[1]
        iota_v = jax.lax.broadcasted_iota(jnp.int32, (TB, S, V), 2)
        onehot = (ids[:, :, None] == iota_v)                     # (TB, S, V) bool
        counts_ref[...] = jnp.sum(onehot, axis=1).astype(jnp.float32)

    # One well-filled MXU matmul per tile: (TB, V) @ (V, TD) -> (TB, TD).
    o_ref[...] = jnp.dot(counts_ref[...], emb_ref[...],
                         preferred_element_type=jnp.float32)


def query_forward(query_ids, emb_table, *, tb=None, td=None):
    """query_ids: [B, S] int, emb_table: [V, D] f32 -> [B, 1, D] f32."""
    query_ids = query_ids.astype(jnp.int32)
    B, S = query_ids.shape
    V, D = emb_table.shape

    # Batch tile: one tile when B is small, otherwise 256-row tiles
    # (multiple of 8 -> sublane-aligned blocks; keeps >=2 grid steps for
    # megacore sharding at large B).
    if tb is None:
        tb = B if B <= 256 else 256

    # D tile: full D when small or not lane-aligned; otherwise 512-wide
    # lane-aligned slabs so very wide tables do not need to fit VMEM at once.
    if td is None:
        td = 512 if (D % 128 == 0 and D > 512) else D

    n_b = pl.cdiv(B, tb)
    n_d = pl.cdiv(D, td)

    # Pad batch to a multiple of tb so every block is full (padded rows use
    # id 0; their outputs are sliced away below).
    Bp = n_b * tb
    if Bp != B:
        query_ids = jnp.pad(query_ids, ((0, Bp - B), (0, 0)))

    out = pl.pallas_call(
        _query_kernel,
        out_shape=jax.ShapeDtypeStruct((Bp, D), jnp.float32),
        grid_spec=pltpu.PrefetchScalarGridSpec(
            num_scalar_prefetch=0,
            grid=(n_b, n_d),
            in_specs=[
                pl.BlockSpec((tb, S), lambda i, j: (i, 0)),   # batch-tile ids
                pl.BlockSpec((V, td), lambda i, j: (0, j)),   # table D-slice
            ],
            out_specs=pl.BlockSpec((tb, td), lambda i, j: (i, j)),
            scratch_shapes=[pltpu.VMEM((tb, V), jnp.float32)],
        ),
        compiler_params=pltpu.CompilerParams(
            dimension_semantics=("parallel", "arbitrary")),
        cost_estimate=pl.CostEstimate(
            flops=2 * Bp * V * D,
            transcendentals=0,
            bytes_accessed=V * D * 4 + Bp * S * 4 + Bp * D * 4),
    )(query_ids, emb_table)

    # unsqueeze(1) in the wrapper -> [B, 1, D] (matches PyTorch output).
    return out[:B, None, :]


if __name__ == "__main__":
    # Small, deterministic setup consistent with the module's __init__.
    vocab_size = 32
    d = 32
    batch = 2
    seq = 8

    key = jax.random.PRNGKey(0)
    k_emb, k_ids = jax.random.split(key)

    # Deterministic "embedding weight" (PyTorch init would be N(0,1)).
    emb_table = jax.random.normal(k_emb, (vocab_size, d), dtype=jnp.float32)
    query_ids = jax.random.randint(k_ids, (batch, seq), 0, vocab_size,
                                   dtype=jnp.int32)

    out = query_forward(query_ids, emb_table)
    out = jax.block_until_ready(out)

    # Pure-JAX reference (embedding gather + sum over seq + unsqueeze(1)).
    ref = jnp.sum(emb_table[query_ids], axis=-2)[:, None, :]
    assert out.shape == (batch, 1, d), out.shape
    assert jnp.allclose(out, ref, atol=1e-5, rtol=1e-5), "mismatch vs reference"

    print("KERNEL_OK")
</pallas_src>

<mosaic_0001>
module attributes {stable_mosaic.version = 11 : i64} {
  func.func @_query_kernel(%arg0: i32, %arg1: i32, %arg2: memref<2x8xi32, #tpu.memory_space<vmem>>, %arg3: memref<32x32xf32, #tpu.memory_space<vmem>>, %arg4: memref<2x32xf32, #tpu.memory_space<vmem>>, %arg5: memref<2x32xf32, #tpu.memory_space<vmem>>) attributes {dimension_semantics = [#tpu.dimension_semantics<parallel>, #tpu.dimension_semantics<arbitrary>], iteration_bounds = array<i64: 1, 1>, scalar_prefetch = 0 : i64, scratch_operands = 1 : i64, tpu.core_type = #tpu.core_type<tc>, window_params = [{transform_indices = @transform_0, window_bounds = array<i64: 2, 8>}, {transform_indices = @transform_1, window_bounds = array<i64: 32, 32>}, {transform_indices = @transform_2, window_bounds = array<i64: 2, 32>}]} {
    %c0_i32 = arith.constant 0 : i32
    %0 = arith.cmpi eq, %arg1, %c0_i32 : i32
    %1 = arith.extui %0 : i1 to i32
    %c0_i32_0 = arith.constant 0 : i32
    %2 = arith.cmpi ne, %1, %c0_i32_0 : i32
    scf.if %2 {
      %c0_6 = arith.constant 0 : index
      %c0_7 = arith.constant 0 : index
      %7 = vector.load %arg2[%c0_6, %c0_7] : memref<2x8xi32, #tpu.memory_space<vmem>>, vector<2x8xi32>
      %8 = tpu.iota {dimensions = array<i32: 2>} : vector<2x8x32xi32>
      %9 = vector.shape_cast %7 : vector<2x8xi32> to vector<2x8x1xi32>
      %10 = vector.broadcast %9 : vector<2x8x1xi32> to vector<2x8x32xi32>
      %11 = arith.cmpi eq, %10, %8 : vector<2x8x32xi32>
      %12 = arith.extui %11 : vector<2x8x32xi1> to vector<2x8x32xi32>
      %cst_8 = arith.constant dense<0> : vector<2x32xi32>
      %13 = vector.multi_reduction <add>, %12, %cst_8 [1] : vector<2x8x32xi32> to vector<2x32xi32>
      %14 = arith.sitofp %13 : vector<2x32xi32> to vector<2x32xf32>
      %c0_9 = arith.constant 0 : index
      %c0_10 = arith.constant 0 : index
      %15 = vector.load %arg5[%c0_9, %c0_10] : memref<2x32xf32, #tpu.memory_space<vmem>>, vector<2x32xf32>
      tpu.vector_store %arg5[%c0_9, %c0_10], %14 {strides = array<i32>} : memref<2x32xf32, #tpu.memory_space<vmem>>, vector<2x32xf32>,
    } else {
    }
    %c0 = arith.constant 0 : index
    %c0_1 = arith.constant 0 : index
    %3 = vector.load %arg5[%c0, %c0_1] : memref<2x32xf32, #tpu.memory_space<vmem>>, vector<2x32xf32>
    %c0_2 = arith.constant 0 : index
    %c0_3 = arith.constant 0 : index
    %4 = vector.load %arg3[%c0_2, %c0_3] : memref<32x32xf32, #tpu.memory_space<vmem>>, vector<32x32xf32>
    %cst = arith.constant dense<0.000000e+00> : vector<2x32xf32>
    %5 = tpu.matmul %3, %4, %cst {dimension_numbers = #tpu.dot_dimension_numbers<[1], [0], [0], [1], [0, 0, 1, 1], [], []>} : vector<2x32xf32>, vector<32x32xf32>, vector<2x32xf32> -> vector<2x32xf32>
    %c0_4 = arith.constant 0 : index
    %c0_5 = arith.constant 0 : index
    %6 = vector.load %arg4[%c0_4, %c0_5] : memref<2x32xf32, #tpu.memory_space<vmem>>, vector<2x32xf32>
    tpu.vector_store %arg4[%c0_4, %c0_5], %5 {strides = array<i32>} : memref<2x32xf32, #tpu.memory_space<vmem>>, vector<2x32xf32>,
    return
  }
  func.func @transform_0(%arg0: i32, %arg1: i32) -> (i32, i32) {
    %c0_i32 = arith.constant 0 : i32
    %c0_i32_0 = arith.constant 0 : i32
    return %arg0, %c0_i32 : i32, i32
  }
  func.func @transform_1(%arg0: i32, %arg1: i32) -> (i32, i32) {
    %c0_i32 = arith.constant 0 : i32
    %c0_i32_0 = arith.constant 0 : i32
    return %c0_i32, %arg1 : i32, i32
  }
  func.func @transform_2(%arg0: i32, %arg1: i32) -> (i32, i32) {
    %c0_i32 = arith.constant 0 : i32
    return %arg0, %arg1 : i32, i32
  }
}

</mosaic_0001>

<bundles_post_ra>
// kernel: tpu_custom_call.1
= control target key start
LH: loop header
LB: loop body
LE: loop exit
PB: predicated region body
PF: predicated region fallthrough
CT: control target
= control target key end

     0   :  { %7 = vsyncpa [#allocation4], 0  ;;  %s310_s0 = inlined_call_operand.hbm [shape: s32[2,8], index: 0, kind: input, shape index: {}]   ;;  %s311_s1 = inlined_call_operand.hbm [shape: f32[32,32], index: 1, kind: input, shape index: {}]   ;;  %s312_s2 = inlined_call_operand.hbm [shape: f32[2,32], index: 2, kind: output, shape index: {}]  }
   0x1   :  { %8 = vsyncpa [#allocation7], 0 }
   0x2   :  { %9 = vsyncpa [#allocation5], 0  ;;  %s275_s9 = smov [#allocation3]   ;;  %s276_s11 = smov [#allocation6]  }
   0x3   :  { %s16_s10 = sshll.u32 %s275_s9, 4  ;;  %s25_s12 = sshll.u32 %s276_s11, 4  ;;  %s17_s10 = int_to_ptr.vmem [resolvable:$true] %s16_s10  ;;  %s26_s12 = int_to_ptr.vmem [resolvable:$true] %s25_s12 }
   0x4   :  { %s217_s13 = scalar_lea.vmem %s17_s10, 32  ;;  %p222_p1 = scmp.lt.s32.totalorder %s17_s10, %s17_s10 }
   0x5   :  { %p218_p0 = scmp.ne.s32.totalorder %s17_s10, %s217_s13  ;;  %p223_p2 = scmp.lt.s32.totalorder %s217_s13, %s217_s13 }
   0x7   :  { %p224_p3 = por %p223_p2, %p222_p1 }
   0x9   :  { %p225_p4 = pnand %p224_p3, %p218_p0 }
   0xb   :  { %228 = shalt.err (!%p225_p4)
}
   0xc   :  { %19 = dma.hbm_to_vmem [thread:$0]  %s310_s0, 32, %s17_s10, [#allocation4]  }
   0xd   :  { %s237_s16 = scalar_lea.vmem %s26_s12, 512  ;;  %p242_p6 = scmp.lt.s32.totalorder %s26_s12, %s26_s12 }
   0xe   :  { %p238_p5 = scmp.ne.s32.totalorder %s26_s12, %s237_s16  ;;  %p243_p7 = scmp.lt.s32.totalorder %s237_s16, %s237_s16 }
  0x10   :  { %p244_p8 = por %p243_p7, %p242_p6 }
  0x12   :  { %p245_p9 = pnand %p244_p8, %p238_p5 }
  0x14   :  { %248 = shalt.err (!%p245_p9)
}
  0x15   :  { %s277_s17 = smov 128   ;;  %s278_s18 = smov 8  }
  0x16   :  { %31 = dma.hbm_to_vmem [thread:$0]  %s311_s1, 512, %s26_s12, [#allocation7], %s277_s17, %s277_s17, %s278_s18  }
  0x17   :  { %269 = dma.done.wait [#allocation4], 32  }
  0x18   :  { %270 = vsyncadd [#allocation4], 4294967264 }
  0x19   :  { %271 = dma.done.wait [#allocation7], 512  }
  0x1a   :  { %272 = vsyncadd [#allocation7], 4294966784  ;;  %v43_v0 = vlaneseq  ;;  %v42_v4 = vld [vmem:[#allocation3] sm:$0x3]  ;;  %v279_v7 = vmov 0.0   ;;  %v90_v9 = vld [vmem:[#allocation6 + $0x10] sm:$0xff] }
  0x1b   :  { %190 = vmatprep.subr.mxu0 %v279_v7  ;;  %v91_v8 = vld [vmem:[#allocation6 + $0x18] sm:$0xff]  ;;  %vm280_vm0 = vmmov 0   ;;  %v89_v10 = vld [vmem:[#allocation6 + $0x8] sm:$0xff]  ;;  %v88_v11 = vld [vmem:[#allocation6] sm:$0xff]  ;;  %vm63_vm1 = vcmask 261120   ;;  %v281_v14 = vmov 0  }
  0x1c   :  { %v46_v1 = vshrl.u32 %v43_v0, 7  ;;  %191 = vmatpush3.msra.mxu0 %v91_v8  ;;  %198 = vmatprep.mubr.msk.f32.mxu0 %vm280_vm0, %v279_v7  ;;  %v44_v12 = vand.u32 127, %v43_v0  ;;  %vm82_vm4 = vcmask 1041409   ;;  %vm85_vm5 = vcmask 254976   ;;  %s282_s0 = smov [#allocation8]  }
  0x1d   :  { %192 = vmatprep.subr.mxu0 %v279_v7  ;;  %s174_s1 = sshll.u32 %s282_s0, 4  ;;  %s175_s1 = int_to_ptr.vmem [resolvable:$true] %s174_s1 }
  0x1e   :  { %v47_v2 = vsub.s32 0, %v46_v1  ;;  %v54_v3 = vsub.s32 1, %v46_v1  ;;  %193 = vmatpush3.msra.mxu0 %v90_v9  ;;  %s249_s21 = scalar_lea.vmem %s175_s1, 32  ;;  %p254_p11 = scmp.lt.s32.totalorder %s175_s1, %s175_s1 }
  0x1f   :  { %194 = vmatprep.subr.mxu0 %v279_v7  ;;  %p250_p10 = scmp.ne.s32.totalorder %s175_s1, %s249_s21  ;;  %p255_p12 = scmp.lt.s32.totalorder %s249_s21, %s249_s21 }
  0x20   :  { %v48_v5 = vrot.slane %v42_v4, %v47_v2  ;;  %v55_v6 = vrot.slane %v42_v4, %v54_v3  ;;  %195 = vmatpush3.msra.mxu0 %v89_v10 }
  0x21   :  { %196 = vmatprep.subr.mxu0 %v279_v7  ;;  %p256_p13 = por %p255_p12, %p254_p11 }
  0x22   :  { %50 = vbcast.lane.b32.xlu0 %v48_v5, 256  ;;  %197 = vmatpush3.msra.mxu0 %v88_v11 }
  0x23   :  { %p257_p0 = pnand %p256_p13, %p250_p10 }
  0x26   :  { %57 = vbcast.lane.b32.xlu0 %v55_v6, 256 }
  0x94   :  { %v51_v13 = vpop.permute.xlu0 %50 }
  0x95   :  { %vm59_vm2 = vcmp.eq.s32.totalorder %v51_v13, %v44_v12 }
  0x96   :  { %v61_v15 = vsel %vm59_vm2, 1, %v281_v14 }
  0x97   :  { %v64_v16 = vsel %vm63_vm1, %v61_v15, 0 }
  0x98   :  { %v65_v17 = vrot.slane %v64_v16, 4  ;;  %v58_v18 = vpop.permute.xlu0 %57 }
  0x99   :  { %vm60_vm3 = vcmp.eq.s32.totalorder %v58_v18, %v44_v12 }
  0x9a   :  { %v66_v19 = vadd.s32 %v65_v17, %v64_v16  ;;  %v62_v20 = vsel %vm60_vm3, 1, %v281_v14 }
  0x9b   :  { %v71_v21 = vsel %vm63_vm1, %v62_v20, 0 }
  0x9c   :  { %v67_v22 = vrot.slane %v66_v19, 2  ;;  %v72_v23 = vrot.slane %v71_v21, 4 }
  0x9e   :  { %v68_v24 = vadd.s32 %v67_v22, %v66_v19  ;;  %v73_v25 = vadd.s32 %v72_v23, %v71_v21 }
  0xa0   :  { %v69_v26 = vrot.slane %v68_v24, 1  ;;  %v74_v27 = vrot.slane %v73_v25, 2 }
  0xa2   :  { %v75_v28 = vadd.s32 %v74_v27, %v73_v25  ;;  %v70_v29 = vadd.s32 %v69_v26, %v68_v24 }
  0xa4   :  { %v76_v30 = vrot.slane %v75_v28, 1  ;;  %v78_v32 = vcvt.s32.f32 %v70_v29 }
  0xa6   :  { %v77_v31 = vadd.s32 %v76_v30, %v75_v28 }
  0xa8   :  { %v79_v33 = vcvt.s32.f32 %v77_v31 }
  0xaa   :  { %v83_v34 = vsel %vm82_vm4, %v79_v33, %v78_v32 }
  0xab   :  { %86 = vst.msk [vmem:[#allocation2] sm:$0x3] %vm85_vm5, %v83_v34 }
  0xb2   :  { %v87_v35 = vld [vmem:[#allocation2] sm:$0x3] }
  0xb3   :  { %199 = vmatmul.mubr.msk.f32.vlgmr.msra.gmra.mxu0 %vm63_vm1, %v87_v35 }
 0x173   :  { %v162_v36 = vpop.f32.mrf.mxu0 }
 0x174   :  { %167 = vst.msk [vmem:[#allocation8] sm:$0x3] %vm85_vm5, %v162_v36 }
 0x175   :  { %v200_v37 = vpop.f32.mrf.mxu0 }
 0x176   :  { %260 = shalt.err (!%p257_p0)
}
 0x177   :  { %177 = dma.vmem_to_hbm [thread:$0]  %s175_s1, 32, %s312_s2, [#allocation5]  }
 0x178   :  { %273 = dma.done.wait [#allocation5], 32  }
 0x179   :  { %274 = vsyncadd [#allocation5], 4294967264 }
 0x17a   :  { %181 = vsyncpa [#allocation4], 1 }
 0x17b   :  { %182 = vsyncpa [#allocation7], 1 }
 0x17c   :  { %183 = vsyncpa [#allocation5], 1 }

</bundles_post_ra>
